<compile_context>
chip_gen: v5e
topology: v5e:2x2
jax: 0.10.0
libtpu: 0.0.40
codegen_flags: <defaults>
</compile_context>

<pallas_src>
import functools

import jax
import jax.numpy as jnp
import numpy as np
from jax.experimental import pallas as pl
from jax.experimental.pallas import tpu as pltpu


def _fused_conv_kernel(x_ref, w_ref, b_ref, out_ref, xpad_ref, *, T, C, K, O, p):
    """One grid step = one block of batch elements.

    x_ref   : (BBLK, C, T)    input block, native layout, T on lanes
    w_ref   : (K, O, C)       fused per-tap weights (compute dtype)
    b_ref   : (O, 1)   f32    fused bias
    out_ref : (BBLK, O, T)    output block, PyTorch (B, O, T) layout, T on lanes
    xpad_ref: (C, T + 2p)     staging buffer for one time-padded element
    """
    BBLK = x_ref.shape[0]

    # Halo columns of the staging buffer are always zero; rewrite them once per
    # grid step (two narrow masked stores), outside the per-element loop.
    if p > 0:
        halo = jnp.zeros((C, p), xpad_ref.dtype)
        xpad_ref[:, :p] = halo
        xpad_ref[:, p + T:] = halo

    # Loop-invariants hoisted out of the batch loop (JAX does not CSE these).
    bias_bc = jnp.broadcast_to(b_ref[...], (O, T))          # f32 accumulator init
    w_taps = [w_ref[i] for i in range(K)]                   # K small (O, C) tiles

    def compute_one(b):
        # Stage one batch element (cast happens on resident data if needed).
        xpad_ref[:, p:p + T] = x_ref[b].astype(xpad_ref.dtype)
        acc = bias_bc
        for i in range(K):                                   # K accumulated shallow
            acc = acc + jnp.dot(w_taps[i],                   # dots -- no K*C*T slab
                                xpad_ref[:, i:i + T],
                                preferred_element_type=jnp.float32)
        out_ref[b] = acc.astype(out_ref.dtype)

    if BBLK <= 8:
        # Short static loop: full unroll gives the LLO scheduler visibility.
        for b in range(BBLK):
            compute_one(b)
    else:
        # Long loop: rolled, keeps the Mosaic program small for big blocks.
        def body(b, carry):
            compute_one(b)
            return carry
        jax.lax.fori_loop(0, BBLK, body, 0)


def _vmem_budget_bytes():
    """Generation-aware per-step VMEM budget (v7x: 64 MiB/TC vs 128 MiB)."""
    cap = 64 << 20                       # conservative default (v7x per-TC VMEM)
    try:
        cap = int(getattr(pltpu.get_tpu_info(), "vmem_capacity_bytes", cap))
    except Exception:
        pass
    return int(min(max(cap // 6, 4 << 20), 24 << 20))


def _choose_batch_block(B, C, T, K, O, p, x_itemsize, compute_itemsize):
    """Pick (batch_block, grid_steps, vmem_limit) with batch_block dividing B."""
    budget = _vmem_budget_bytes()
    # Pallas double-buffers the pipelined input and output blocks.
    per_b = 2 * x_itemsize * C * T + 2 * 4 * O * T
    # Step-invariant VMEM: staging buffer, f32 accumulator, fused weights/bias.
    fixed = compute_itemsize * (C * (T + 2 * p) + K * O * C) + 4 * O * (T + 1)
    bb_budget = max(1, (budget - fixed) // max(per_b, 1))
    # Keep >= 4 grid steps when the batch allows it: >= 2 steps per TensorCore
    # after megacore sharding (v7x), and enough steps for input DMA / compute /
    # output writeback to overlap on single-core parts (v5e, v6e).
    bb_steps = max(1, B // 4) if B >= 4 else 1
    cap = int(max(1, min(B, bb_budget, bb_steps)))
    bb = 1
    for d in range(1, cap + 1):          # largest divisor of B <= cap: avoids any
        if B % d == 0:                   # wrapper batch-pad / out[:B] HBM passes
            bb = d
    steps = B // bb
    need = bb * per_b + fixed
    vmem_limit = int(min(32 << 20, max(16 << 20, 2 * need)))
    return bb, steps, vmem_limit


@functools.partial(jax.jit,
                   static_argnames=("kernel_length", "padding", "compute_dtype"))
def two_step_spatial_temporal_conv(x, w1, b1, w2, b2, *, kernel_length, padding,
                                   compute_dtype=jnp.float32):
    """x: (B, C, T); w1: (M,1,K,K); b1: (M,); w2: (O,M,1,C); b2: (O,) -> (B, O, T)."""
    B, C, T = x.shape
    M, _, K, K2 = w1.shape
    O = w2.shape[0]
    p = padding
    assert K == kernel_length and K == K2
    # The PyTorch module is only usable with "same" padding (width stays == C).
    assert K % 2 == 1 and p == K // 2, "requires odd kernel_length, padding=K//2"
    assert w2.shape == (O, M, 1, C)

    f32 = jnp.float32
    w1s = w1[:, 0, :, :].astype(f32)          # (M, K, K)   [m, i, j]
    w2s = w2[:, :, 0, :].astype(f32)          # (O, M, C)   [o, m, w']

    # ---- algebraic fusion of conv_temporal + conv_spatial (parameter-only) ----
    # Weff[i, o, c] = sum_{m,j} w1[m,0,i,j] * w2[o,m,0,c+p-j]   (valid taps only)
    weff = jnp.zeros((K, O, C), f32)
    for j in range(K):
        c_lo, c_hi = max(0, j - p), min(C, C + j - p)
        if c_hi <= c_lo:
            continue
        wp_lo, wp_hi = c_lo + p - j, c_hi + p - j
        weff = weff.at[:, :, c_lo:c_hi].add(
            jnp.einsum("mi,omc->ioc", w1s[:, :, j], w2s[:, :, wp_lo:wp_hi]))
    w_fused = weff.astype(compute_dtype)                                 # (K, O, C)
    b_fused = (b2.astype(f32)
               + jnp.einsum("m,omc->o", b1.astype(f32), w2s))[:, None]   # (O, 1)

    b_blk, steps, vmem_limit = _choose_batch_block(
        B, C, T, K, O, p,
        jnp.dtype(x.dtype).itemsize, jnp.dtype(compute_dtype).itemsize)

    kernel = functools.partial(_fused_conv_kernel, T=T, C=C, K=K, O=O, p=p)

    out = pl.pallas_call(
        kernel,
        out_shape=jax.ShapeDtypeStruct((B, O, T), jnp.float32),
        grid=(steps,),
        in_specs=[
            pl.BlockSpec((b_blk, C, T), lambda b: (b, 0, 0)),
            pl.BlockSpec((K, O, C), lambda b: (0, 0, 0)),
            pl.BlockSpec((O, 1), lambda b: (0, 0)),
        ],
        out_specs=pl.BlockSpec((b_blk, O, T), lambda b: (b, 0, 0)),
        scratch_shapes=[pltpu.VMEM((C, T + 2 * p), compute_dtype)],
        compiler_params=pltpu.CompilerParams(
            dimension_semantics=("parallel",),
            vmem_limit_bytes=vmem_limit),
    )(x, w_fused, b_fused)

    return out   # already in PyTorch (B, O, T) layout; no pad/slice HBM passes


def reference_forward(x, w1, b1, w2, b2, *, padding):
    """Plain-JAX reference reproducing the PyTorch forward exactly."""
    inp = jnp.transpose(x, (0, 2, 1))[:, None, :, :]  # (B, 1, T, C)  == NCHW
    dn = ("NCHW", "OIHW", "NCHW")
    o1 = jax.lax.conv_general_dilated(
        inp, w1, (1, 1), padding=((padding, padding), (padding, padding)),
        dimension_numbers=dn) + b1[None, :, None, None]
    o2 = jax.lax.conv_general_dilated(
        o1, w2, (1, 1), padding="VALID", dimension_numbers=dn
    ) + b2[None, :, None, None]
    assert o2.shape[-1] == 1
    return o2[..., 0]  # (B, O, T)


if __name__ == "__main__":
    # Module hyper-parameters (small, consistent with the forward pass).
    in_channels = 4          # EEG channels C
    out_channels = 8
    kernel_length = 3        # odd; conv_args = dict(padding=kernel_length // 2)
    padding = kernel_length // 2
    B, T = 2, 16
    M = in_channels * 2

    key = jax.random.PRNGKey(0)
    kx, k1w, k1b, k2w, k2b = jax.random.split(key, 5)

    x = jax.random.normal(kx, (B, in_channels, T), dtype=jnp.float32)

    # Deterministic parameter init mimicking PyTorch Conv2d defaults
    # (uniform(-1/sqrt(fan_in), 1/sqrt(fan_in))).
    fan1 = 1 * kernel_length * kernel_length
    bnd1 = 1.0 / float(np.sqrt(fan1))
    w1 = jax.random.uniform(k1w, (M, 1, kernel_length, kernel_length),
                            minval=-bnd1, maxval=bnd1, dtype=jnp.float32)
    b1 = jax.random.uniform(k1b, (M,), minval=-bnd1, maxval=bnd1, dtype=jnp.float32)

    fan2 = M * 1 * in_channels
    bnd2 = 1.0 / float(np.sqrt(fan2))
    w2 = jax.random.uniform(k2w, (out_channels, M, 1, in_channels),
                            minval=-bnd2, maxval=bnd2, dtype=jnp.float32)
    b2 = jax.random.uniform(k2b, (out_channels,), minval=-bnd2, maxval=bnd2,
                            dtype=jnp.float32)

    out = two_step_spatial_temporal_conv(
        x, w1, b1, w2, b2, kernel_length=kernel_length, padding=padding)
    out = jax.block_until_ready(out)

    ref = jax.block_until_ready(
        reference_forward(x, w1, b1, w2, b2, padding=padding))

    assert out.shape == (B, out_channels, T), out.shape
    np.testing.assert_allclose(np.asarray(out), np.asarray(ref),
                               rtol=1e-5, atol=1e-5)
    print("KERNEL_OK")
</pallas_src>

<mosaic_0001>
module attributes {stable_mosaic.version = 11 : i64} {
  func.func @_fused_conv_kernel(%arg0: i32, %arg1: memref<1x4x16xf32, #tpu.memory_space<vmem>>, %arg2: memref<3x8x4xf32, #tpu.memory_space<vmem>>, %arg3: memref<8x1xf32, #tpu.memory_space<vmem>>, %arg4: memref<1x8x16xf32, #tpu.memory_space<vmem>>, %arg5: memref<4x18xf32, #tpu.memory_space<vmem>>) attributes {dimension_semantics = [#tpu.dimension_semantics<parallel>], iteration_bounds = array<i64: 2>, scalar_prefetch = 0 : i64, scratch_operands = 1 : i64, tpu.core_type = #tpu.core_type<tc>, window_params = [{transform_indices = @transform_0, window_bounds = array<i64: 1, 4, 16>}, {pipeline_mode = #tpu.pipeline_mode<synchronous>, transform_indices = @transform_1, window_bounds = array<i64: 3, 8, 4>}, {pipeline_mode = #tpu.pipeline_mode<synchronous>, transform_indices = @transform_2, window_bounds = array<i64: 8, 1>}, {transform_indices = @transform_3, window_bounds = array<i64: 1, 8, 16>}]} {
    %cst = arith.constant 0.000000e+00 : f32
    %0 = vector.broadcast %cst : f32 to vector<4x1xf32>
    %c0 = arith.constant 0 : index
    %c0_0 = arith.constant 0 : index
    %1 = vector.load %arg5[%c0, %c0_0] : memref<4x18xf32, #tpu.memory_space<vmem>>, vector<4x1xf32>
    tpu.vector_store %arg5[%c0, %c0_0], %0 {strides = array<i32>} : memref<4x18xf32, #tpu.memory_space<vmem>>, vector<4x1xf32>,
    %c0_1 = arith.constant 0 : index
    %c17 = arith.constant 17 : index
    %2 = vector.load %arg5[%c0_1, %c17] : memref<4x18xf32, #tpu.memory_space<vmem>>, vector<4x1xf32>
    tpu.vector_store %arg5[%c0_1, %c17], %0 {strides = array<i32>} : memref<4x18xf32, #tpu.memory_space<vmem>>, vector<4x1xf32>,
    %c0_2 = arith.constant 0 : index
    %c0_3 = arith.constant 0 : index
    %3 = vector.load %arg3[%c0_2, %c0_3] : memref<8x1xf32, #tpu.memory_space<vmem>>, vector<8x1xf32>
    %4 = vector.shape_cast %3 : vector<8x1xf32> to vector<8x1xf32>
    %5 = vector.broadcast %4 : vector<8x1xf32> to vector<8x16xf32>
    %c0_4 = arith.constant 0 : index
    %c0_5 = arith.constant 0 : index
    %c0_6 = arith.constant 0 : index
    %6 = vector.load %arg2[%c0_4, %c0_5, %c0_6] : memref<3x8x4xf32, #tpu.memory_space<vmem>>, vector<1x8x4xf32>
    %7 = vector.shape_cast %6 : vector<1x8x4xf32> to vector<8x4xf32>
    %c1 = arith.constant 1 : index
    %c0_7 = arith.constant 0 : index
    %c0_8 = arith.constant 0 : index
    %8 = vector.load %arg2[%c1, %c0_7, %c0_8] : memref<3x8x4xf32, #tpu.memory_space<vmem>>, vector<1x8x4xf32>
    %9 = vector.shape_cast %8 : vector<1x8x4xf32> to vector<8x4xf32>
    %c2 = arith.constant 2 : index
    %c0_9 = arith.constant 0 : index
    %c0_10 = arith.constant 0 : index
    %10 = vector.load %arg2[%c2, %c0_9, %c0_10] : memref<3x8x4xf32, #tpu.memory_space<vmem>>, vector<1x8x4xf32>
    %11 = vector.shape_cast %10 : vector<1x8x4xf32> to vector<8x4xf32>
    %c0_11 = arith.constant 0 : index
    %c0_12 = arith.constant 0 : index
    %c0_13 = arith.constant 0 : index
    %12 = vector.load %arg1[%c0_11, %c0_12, %c0_13] : memref<1x4x16xf32, #tpu.memory_space<vmem>>, vector<1x4x16xf32>
    %13 = vector.shape_cast %12 : vector<1x4x16xf32> to vector<4x16xf32>
    %c0_14 = arith.constant 0 : index
    %c1_15 = arith.constant 1 : index
    %14 = vector.load %arg5[%c0_14, %c1_15] : memref<4x18xf32, #tpu.memory_space<vmem>>, vector<4x16xf32>
    tpu.vector_store %arg5[%c0_14, %c1_15], %13 {strides = array<i32>} : memref<4x18xf32, #tpu.memory_space<vmem>>, vector<4x16xf32>,
    %c0_16 = arith.constant 0 : index
    %c0_17 = arith.constant 0 : index
    %15 = vector.load %arg5[%c0_16, %c0_17] : memref<4x18xf32, #tpu.memory_space<vmem>>, vector<4x16xf32>
    %cst_18 = arith.constant dense<0.000000e+00> : vector<8x16xf32>
    %16 = tpu.matmul %7, %15, %cst_18 {dimension_numbers = #tpu.dot_dimension_numbers<[1], [0], [0], [1], [0, 0, 1, 1], [], []>} : vector<8x4xf32>, vector<4x16xf32>, vector<8x16xf32> -> vector<8x16xf32>
    %17 = arith.addf %5, %16 : vector<8x16xf32>
    %c0_19 = arith.constant 0 : index
    %c1_20 = arith.constant 1 : index
    %18 = vector.load %arg5[%c0_19, %c1_20] : memref<4x18xf32, #tpu.memory_space<vmem>>, vector<4x16xf32>
    %cst_21 = arith.constant dense<0.000000e+00> : vector<8x16xf32>
    %19 = tpu.matmul %9, %18, %cst_21 {dimension_numbers = #tpu.dot_dimension_numbers<[1], [0], [0], [1], [0, 0, 1, 1], [], []>} : vector<8x4xf32>, vector<4x16xf32>, vector<8x16xf32> -> vector<8x16xf32>
    %20 = arith.addf %17, %19 : vector<8x16xf32>
    %c0_22 = arith.constant 0 : index
    %c2_23 = arith.constant 2 : index
    %21 = vector.load %arg5[%c0_22, %c2_23] : memref<4x18xf32, #tpu.memory_space<vmem>>, vector<4x16xf32>
    %cst_24 = arith.constant dense<0.000000e+00> : vector<8x16xf32>
    %22 = tpu.matmul %11, %21, %cst_24 {dimension_numbers = #tpu.dot_dimension_numbers<[1], [0], [0], [1], [0, 0, 1, 1], [], []>} : vector<8x4xf32>, vector<4x16xf32>, vector<8x16xf32> -> vector<8x16xf32>
    %23 = arith.addf %20, %22 : vector<8x16xf32>
    %c0_25 = arith.constant 0 : index
    %c0_26 = arith.constant 0 : index
    %c0_27 = arith.constant 0 : index
    %24 = vector.load %arg4[%c0_25, %c0_26, %c0_27] : memref<1x8x16xf32, #tpu.memory_space<vmem>>, vector<1x8x16xf32>
    %25 = vector.shape_cast %24 : vector<1x8x16xf32> to vector<8x16xf32>
    %26 = vector.shape_cast %23 : vector<8x16xf32> to vector<1x8x16xf32>
    tpu.vector_store %arg4[%c0_25, %c0_26, %c0_27], %26 {strides = array<i32>} : memref<1x8x16xf32, #tpu.memory_space<vmem>>, vector<1x8x16xf32>,
    return
  }
  func.func @transform_0(%arg0: i32) -> (i32, i32, i32) {
    %c0_i32 = arith.constant 0 : i32
    %c0_i32_0 = arith.constant 0 : i32
    %c0_i32_1 = arith.constant 0 : i32
    return %arg0, %c0_i32, %c0_i32_0 : i32, i32, i32
  }
  func.func @transform_1(%arg0: i32) -> (i32, i32, i32) {
    %c0_i32 = arith.constant 0 : i32
    %c0_i32_0 = arith.constant 0 : i32
    %c0_i32_1 = arith.constant 0 : i32
    %c0_i32_2 = arith.constant 0 : i32
    return %c0_i32, %c0_i32_0, %c0_i32_1 : i32, i32, i32
  }
  func.func @transform_2(%arg0: i32) -> (i32, i32) {
    %c0_i32 = arith.constant 0 : i32
    %c0_i32_0 = arith.constant 0 : i32
    %c0_i32_1 = arith.constant 0 : i32
    return %c0_i32, %c0_i32_0 : i32, i32
  }
  func.func @transform_3(%arg0: i32) -> (i32, i32, i32) {
    %c0_i32 = arith.constant 0 : i32
    %c0_i32_0 = arith.constant 0 : i32
    %c0_i32_1 = arith.constant 0 : i32
    return %arg0, %c0_i32, %c0_i32_0 : i32, i32, i32
  }
}

</mosaic_0001>

<bundles_post_ra>
// kernel: two_step_spatial_temporal_conv.1
= control target key start
LH: loop header
LB: loop body
LE: loop exit
PB: predicated region body
PF: predicated region fallthrough
CT: control target
= control target key end

     0   :  { %8 = vsyncpa [#allocation4], 0  ;;  %s604_s0 = inlined_call_operand.vmem [shape: f32[2,4,16], index: 0, kind: input, shape index: {}]   ;;  %s605_s1 = inlined_call_operand.vmem [shape: f32[3,8,4], index: 1, kind: input, shape index: {}]   ;;  %s606_s2 = inlined_call_operand.vmem [shape: f32[8,1], index: 2, kind: input, shape index: {}]   ;;  %s607_s3 = inlined_call_operand.hbm [shape: f32[2,8,16], index: 3, kind: output, shape index: {}]  }
   0x1   :  { %10 = vsyncpa [#allocation4 + $0x1], 0  ;;  %s504_s12 = smov 0   ;;  %s506_s13 = smov 0  }
   0x2   :  { %s508_s14 = smov 0   ;;  %s510_s15 = smov 0  }
   0x3 LB: > { %s525_s16 = sadd.s32 4294967295, %s477_s15   ;;  %s351_s17 = sadd.s32 4294967294, %s477_s15   ;;  %s477_s15 = sphi %s510_s15, %s613_s15   ;;  %s473_s14 = sphi %s508_s14, %s612_s14   ;;  %s469_s13 = sphi %s506_s13, %s611_s13   ;;  %s465_s12 = sphi %s504_s12, %s610_s12  }
   0x4   : > { %s529_s18 = sadd.s32 1, %s477_s15   ;;  %s91_s19 = sadd.s32 1, %s473_s14 }
   0x5   : > { %s88_s20 = ssub.s32 %s477_s15, %s529_s18  ;;  %p101_p0 = scmp.ne.s32.totalorder %s473_s14, %s469_s13 }
   0x6   : > { %p89_p1 = scmp.eq.s32.totalorder %s88_s20, 0  ;;  %p102_p2 = scmp.eq.s32.totalorder %s525_s16, 1 }
   0x7   : > { %p107_p3 = scmp.ne.s32.totalorder %s469_s13, %s465_s12  ;;  %p108_p4 = scmp.eq.s32.totalorder %s351_s17, 1 }
   0x8   : > { %s540_s21 = scalar_select %p89_p1, %s473_s14, %s91_s19  }
   0x9   : > { %p542_p5 = por %p102_p2, %p101_p0  ;;  %p546_p6 = por %p108_p4, %p107_p3 }
   0xa   : > { %p354_p7 = scmp.ge.s32.totalorder %s477_s15, 1  ;;  %p139_p8 = scmp.lt.s32.totalorder %s477_s15, 3 }
   0xc   : > { %p140_p9 = pnand %p354_p7, %p139_p8 }
   0xd   : > { %p162_p10 = scmp.lt.s32.totalorder (!%p140_p9), %s525_s16, 1  ;;  %s480_s29 = smov (!%p140_p9), 1  }
   0xe   : > { %143 = sbr.rel (%p140_p9) target bundleno = 400 (0x190), region = 32  ;;  %s481_s30 = smov (!%p140_p9), 127  }
   0xf   : > { %s482_s4 = smov (!%p140_p9), 126   ;;  %s159_s19 = sand.u32 (!%p140_p9), 1, %s469_s13  }
  0x10   : > { %s355_s20 = sshll.u32 (!%p140_p9), %s159_s19, 3  ;;  %s435_s8 = scalar_lea.hbm (!%p140_p9), %s607_s3, 16 }
  0x13   : > { %vm166_vm0 = vcmask 3072   ;;  %vm168_vm1 = vcmask 142472   ;;  %v479_v0 = vmov 0.0   ;;  %s163_s24 = scalar_select %p162_p10, %s525_s16, 1  ;;  %vm186_vm2 = vcmask 134152   ;;  %v176_v4 = vld [vmem:[%s605_s1] sm:$0xff] }
  0x14   : > { %167 = vst.msk [vmem:[#allocation2] sm:$0xf] %vm166_vm0, %v479_v0  ;;  %vm193_vm3 = vcmask 1043456   ;;  %vm189_vm4 = vcmask 31744   ;;  %v170_v5 = vld [vmem:[%s606_s2] sm:$0xff]  ;;  %v483_v6 = vmov 0  }
  0x15   : > { %169 = vst.msk [vmem:[#allocation2] sm:$0xf] %vm168_vm1, %v479_v0  ;;  %s356_s25 = sshll.u32 %s163_s24, 2  ;;  %413 = vset.pattern.permute.xlu1 %v483_v6  ;;  %414 = vset.pattern.permute.xlu0 %v483_v6  ;;  %v358_v7 = vld [vmem:[%s605_s1 + $0x10] sm:$0xff]  ;;  %v357_v8 = vld [vmem:[%s605_s1 + $0x8] sm:$0xff]  ;;  %s366_s24 = sshll.u32 %s525_s16, 3 }
  0x16   : > { %s165_s28 = scalar_lea.vmem %s604_s0, %s356_s25  ;;  %s287_s27 = scalar_lea.hbm %s607_s3, %s366_s24  ;;  %vm274_vm5 = vcmask 130048  }
  0x17   : > { %v181_v1 = vld [vmem:[%s165_s28] sm:$0xf]  ;;  %s161_s28 = scalar_lea.vmem [#allocation3], %s355_s20 }
  0x18   : > { %183 = vrot.lane.b32.xlu0 %v181_v1, %s480_s29  ;;  %s289_s29 = sshll.u32 %s161_s28, 4  ;;  %s290_s29 = int_to_ptr.vmem [resolvable:$true] %s289_s29 }
  0x8a   : > { %v184_v2 = vpop.permute.xlu0 %183 }
  0x8b   : > { %187 = vst.msk [vmem:[#allocation2] sm:$0xf] %vm186_vm2, %v184_v2 }
  0x92   : > { %v188_v3 = vld [vmem:[#allocation2] sm:$0xf] }
  0x93   : > { %218 = vrot.lane.b32.xlu1 %v188_v3, %s481_s30  ;;  %246 = vrot.lane.b32.xlu0 %v188_v3, %s482_s4  ;;  %s291_s30 = sshll.u32 %s287_s27, 4  ;;  %s277_s4 = scalar_lea.sflag [#allocation4], %s159_s19  ;;  %s292_s30 = int_to_ptr.hbm [resolvable:$true] %s291_s30 }
  0x94   : > { %359 = vmatpush.msk.msra.mxu0 %vm193_vm3, %v188_v3  ;;  %s429_s5 = sshra.s32 %s292_s30, 4  ;;  %s430_s5 = int_to_ptr.hbm [resolvable:$true] %s429_s5 }
  0x95   : > { %360 = vmatmul.msk.f32.vlgmr.msra.gmra.mxu0 %vm189_vm4, %v176_v4  ;;  %s431_s16 = scalar_lea.hbm %s430_s5, 8  ;;  %p436_p0 = scmp.lt.s32.totalorder %s430_s5, %s607_s3 }
  0x96   : > { %p432_p11 = scmp.ne.s32.totalorder %s430_s5, %s431_s16  ;;  %p437_p1 = scmp.lt.s32.totalorder %s435_s8, %s431_s16 }
  0x98   : > { %p433_p12 = pnand %p432_p11, %p542_p5  ;;  %p438_p2 = por %p437_p1, %p436_p0 }
  0x9a   : > { %p434_p13 = pneg %p433_p12 }
  0x9b   : > { %173 = vperm.xlu1 %413, %v170_v5  }
  0x9c   : > { %p439_p3 = pnand %p438_p2, %p434_p13 }
 0x105   : > { %v219_v9 = vpop.permute.xlu1 %218  ;;  %v247_v10 = vpop.permute.xlu0 %246 }
 0x106   : > { %361 = vmatpush.msk.msra.mxu1 %vm193_vm3, %v219_v9  ;;  %363 = vmatpush.msk.msra.mxu2 %vm193_vm3, %v247_v10 }
 0x107   : > { %364 = vmatmul.msk.f32.vlgmr.msra.gmra.mxu2 %vm189_vm4, %v358_v7  ;;  %362 = vmatmul.msk.f32.vlgmr.msra.gmra.mxu1 %vm189_vm4, %v357_v8 }
 0x10d   : > { %v174_v11 = vpop.permute.xlu1 %173 }
 0x112   : > { %v214_v12 = vpop.f32.mrf.mxu0 }
 0x113   : > { %v217_v13 = vadd.f32 %v214_v12, %v174_v11 }
 0x184   : > { %v242_v14 = vpop.f32.mrf.mxu1 }
 0x185   : > { %v245_v15 = vadd.f32 %v242_v14, %v217_v13 }
 0x18a   : > { %v270_v16 = vpop.f32.mrf.mxu2 }
 0x18b   : > { %v273_v17 = vadd.f32 %v270_v16, %v245_v15 }
 0x18d   : > { %275 = vst.msk [vmem:[%s161_s28] sm:$0xff] %vm274_vm5, %v273_v17 }
 0x18e   : > { %442 = shalt.err (!%p439_p3)
}
 0x18f   : > { %369 = dma.vmem_to_hbm [thread:$0]  (%p542_p5), %s290_s29, 128, %s292_s30, %s277_s4  }
 0x190 PF: > { %p375_p4 = scmp.ge.s32.totalorder %s477_s15, 2  ;;  %s303_s11 = sand.u32 1, %s465_s12  }
 0x191   : > { %s304_s17 = scalar_lea.sflag [#allocation4], %s303_s11 }
 0x192   : > { %p372_p7 = pnand %p375_p4, %p546_p6 }
 0x194   : > { %p373_p8 = pneg %p372_p7 }
 0x196   : > { %460 = dma.done.wait (%p373_p8), %s304_s17, 128  }
 0x197   : > { %462 = vsyncadd (%p373_p8), %s304_s17, 4294967168  ;;  %p13_p9 = scmp.ge.s32.totalorder %s529_s18, 4   ;;  %s610_s12 = smov %s469_s13 }
 0x198   : > { %s611_s13 = smov %s473_s14  ;;  %s612_s14 = smov %s540_s21 }
 0x199   : > { %s613_s15 = smov %s529_s18  ;;  %15 = sbr.rel (!%p13_p9) target bundleno = 3 (0x3), region = 69 }
 0x19e   :  { %310 = vsyncpa [#allocation4], 1 }
 0x19f   :  { %312 = vsyncpa [#allocation4 + $0x1], 1 }

</bundles_post_ra>
